<compile_context>
chip_gen: v5e
topology: v5e:2x2
jax: 0.10.0
libtpu: 0.0.40
codegen_flags: <defaults>
</compile_context>

<pallas_src>
import math

import jax
import jax.numpy as jnp
from jax.experimental import pallas as pl
from jax.experimental.pallas import tpu as pltpu


def sales_predictor_kernel(
    dyn_ref, stat_ref,
    w_ih_ref, w_hh_ref, b_lstm_ref,
    w_s1_ref, b_s1_ref, w_s2_ref, b_s2_ref,
    w_fc1h_ref, w_fc1s_ref, b_fc1_ref, w_fc2_ref, b_fc2_ref,
    out_ref,
):
    T, B, F = dyn_ref.shape          # time-major dynamic input block (B = block_b)
    H = w_hh_ref.shape[0]            # w_hh is (H, 4H), gate cols [i|f|o|g]

    w_hh = w_hh_ref[...]

    # --- Hoisted input projection (one matmul, off the serial path) ----------
    # When B % 8 == 0 (guaranteed by the wrapper except for tiny batches) the
    # (T, B, F) -> (T*B, F) merge keeps F on lanes and stacks whole sublane tiles,
    # so it is layout-preserving (no VMEM relayout copy).
    x_all = dyn_ref[...].reshape(T * B, F)
    gates_x = (jnp.dot(x_all, w_ih_ref[...], preferred_element_type=jnp.float32)
               + b_lstm_ref[...])                       # (T*B, 4H) f32, bias folded

    h = jnp.zeros((B, H), jnp.float32)
    c = jnp.zeros((B, H), jnp.float32)

    # --- LSTM recurrence: only h @ W_hh is serialized -------------------------
    # Gate column order is [i | f | o | g]: one sigmoid over 3H lanes, one tanh over H.
    # TODO(synk): on v5e/v6e hold W_hh resident in MXU weight registers across the
    # T steps (pltpu.matmul_push_rhs / matmul_acc_lhs / matmul_pop).
    def step(gx, h, c):
        gates = gx + jnp.dot(h.astype(w_hh.dtype), w_hh,
                             preferred_element_type=jnp.float32)   # (B, 4H)
        sig = jax.nn.sigmoid(gates[:, :3 * H])          # i, f, o in one EUP pass
        g_g = jnp.tanh(gates[:, 3 * H:])
        i_g = sig[:, 0 * H:1 * H]
        f_g = sig[:, 1 * H:2 * H]
        o_g = sig[:, 2 * H:3 * H]
        c = f_g * c + i_g * g_g
        h = o_g * jnp.tanh(c)
        return h, c

    if T <= 16:
        # Short sequence: static unroll keeps full LLO scheduler visibility.
        for t in range(T):
            h, c = step(gates_x[t * B:(t + 1) * B, :], h, c)
    else:
        # Long sequence: bound live ranges / compile time with fori_loop.
        def body(t, carry):
            hh, cc = carry
            start = t * B
            if B % 8 == 0:
                start = pl.multiple_of(start, 8)        # keep slices sublane-aligned
            gx = jax.lax.dynamic_slice_in_dim(gates_x, start, B, axis=0)
            return step(gx, hh, cc)
        h, c = jax.lax.fori_loop(0, T, body, (h, c), unroll=2)

    # --- static MLP: Linear -> ReLU -> Linear -> ReLU --------------------------
    s = stat_ref[...]
    s1 = jnp.maximum(
        jnp.dot(s, w_s1_ref[...], preferred_element_type=jnp.float32) + b_s1_ref[...],
        0.0)
    s2 = jnp.maximum(
        jnp.dot(s1, w_s2_ref[...], preferred_element_type=jnp.float32) + b_s2_ref[...],
        0.0)

    # --- concat-free fc1: two dots into one accumulator ------------------------
    y = jnp.maximum(
        jnp.dot(h, w_fc1h_ref[...], preferred_element_type=jnp.float32)
        + jnp.dot(s2, w_fc1s_ref[...], preferred_element_type=jnp.float32)
        + b_fc1_ref[...],
        0.0)                                             # (B, FC)

    # --- fc2 + final ReLU, produced directly in lane-dense (1, B) orientation ---
    # NT contraction over FC: no lane-sparse (B, 1) column, no masked stores.
    row = jax.lax.dot_general(
        w_fc2_ref[...], y, (((1,), (1,)), ((), ())),
        preferred_element_type=jnp.float32) + b_fc2_ref[...]   # (1, B)
    out_ref[...] = jnp.maximum(row, 0.0)[None]                 # (1, 1, B)


def _pick_block_b(B, T, F, H, vmem_budget=8 * 2**20):
    """Batch rows per grid step: sublane-aligned, VMEM-capped, >=2 steps for big B.

    Caps the per-block f32 working set (~gates_x dominated) at `vmem_budget`,
    which keeps us under the 16 MiB v5e default scoped-VMEM limit and leaves room
    for double-buffered input/output blocks on v6e/v7x.
    """
    if B <= 8 or B % 8 != 0:
        return B                               # tiny / unaligned batch: one block
    # f32 bytes per batch row that scale with block_b: gates_x (T*4H), the
    # double-buffered dyn block, h/c/gate temporaries and the fc1 activation.
    per_row = 4 * (T * 4 * H + 2 * T * F + 12 * H + 256)
    cap = min(256, B // 2, max(8, vmem_budget // per_row))
    cap = max(8, (int(cap) // 8) * 8)
    blk = cap
    while B % blk != 0:                        # exact tiling (keeps output reshape trivial)
        blk -= 8
    return blk


def init_params(key, num_dynamic, lstm_hidden, fc_hidden, num_static):
    """Deterministic, PyTorch-default-style uniform init (PyTorch layouts)."""
    static_dim = 16
    keys = jax.random.split(key, 12)

    def u(k, shape, fan_in):
        bound = 1.0 / math.sqrt(fan_in)
        return jax.random.uniform(k, shape, jnp.float32, -bound, bound)

    H = lstm_hidden
    return {
        # nn.LSTM params (PyTorch-style (4H, in), gate row order i,f,g,o)
        "w_ih": u(keys[0], (4 * H, num_dynamic), H),
        "w_hh": u(keys[1], (4 * H, H), H),
        "b_ih": u(keys[2], (4 * H,), H),
        "b_hh": u(keys[3], (4 * H,), H),
        # static_mlp
        "w_s1": u(keys[4], (64, num_static), num_static),
        "b_s1": u(keys[5], (64,), num_static),
        "w_s2": u(keys[6], (static_dim, 64), 64),
        "b_s2": u(keys[7], (static_dim,), 64),
        # fc1 / fc2
        "w_fc1": u(keys[8], (fc_hidden, H + static_dim), H + static_dim),
        "b_fc1": u(keys[9], (fc_hidden,), H + static_dim),
        "w_fc2": u(keys[10], (1, fc_hidden), fc_hidden),
        "b_fc2": u(keys[11], (1,), fc_hidden),
    }


def sales_predictor_forward(dynamic_seq, static_feats, p, *, mxu_dtype=jnp.float32):
    """Pallas forward pass.  mxu_dtype=jnp.bfloat16 enables bf16 MXU operands
    (f32 accumulation) for the LSTM projections; default f32 preserves the 1e-4
    tolerance vs. the PyTorch-semantics reference."""
    B, T, F = dynamic_seq.shape
    H = p["w_hh"].shape[1]
    Fs = static_feats.shape[1]

    def reorder_cols(w):
        # columns [i | f | g | o]  ->  [i | f | o | g]
        return jnp.concatenate([w[:, :2 * H], w[:, 3 * H:], w[:, 2 * H:3 * H]], axis=1)

    # Weights pre-transposed to (in, out); LSTM gate columns reordered; biases (1, N).
    w_ih = reorder_cols(jnp.asarray(p["w_ih"]).T).astype(mxu_dtype)      # (F, 4H)
    w_hh = reorder_cols(jnp.asarray(p["w_hh"]).T).astype(mxu_dtype)      # (H, 4H)
    b_lstm = reorder_cols((p["b_ih"] + p["b_hh"])[None, :])              # (1, 4H) f32

    w_fc1_t = jnp.asarray(p["w_fc1"]).T                                  # (H+16, FC)
    w_fc1_h = w_fc1_t[:H]                                                # (H, FC)
    w_fc1_s = w_fc1_t[H:]                                                # (16, FC)

    # Time-major dynamic input so per-step gate slices are contiguous rows.
    dyn_tm = jnp.transpose(dynamic_seq.astype(jnp.float32), (1, 0, 2)).astype(mxu_dtype)
    stat = static_feats.astype(jnp.float32)

    block_b = _pick_block_b(B, T, F, H)
    num_blocks = B // block_b

    weight_spec = pl.BlockSpec(memory_space=pltpu.MemorySpace.VMEM)  # whole array, resident
    in_specs = [
        pl.BlockSpec((T, block_b, F), lambda b: (0, b, 0)),
        pl.BlockSpec((block_b, Fs), lambda b: (b, 0)),
    ] + [weight_spec] * 12
    # Lane-dense output: batch along lanes, one (1, block_b) row per grid step.
    out_specs = pl.BlockSpec((1, 1, block_b), lambda b: (b, 0, 0))

    args = (
        dyn_tm, stat,
        w_ih, w_hh, b_lstm,
        jnp.asarray(p["w_s1"]).T, p["b_s1"][None, :],
        jnp.asarray(p["w_s2"]).T, p["b_s2"][None, :],
        w_fc1_h, w_fc1_s, p["b_fc1"][None, :],
        jnp.asarray(p["w_fc2"]),           # (1, FC): used directly in the NT fc2 dot
        p["b_fc2"][None, :],               # (1, 1)
    )

    out3 = pl.pallas_call(
        sales_predictor_kernel,
        out_shape=jax.ShapeDtypeStruct((num_blocks, 1, block_b), jnp.float32),
        grid=(num_blocks,),
        in_specs=in_specs,
        out_specs=out_specs,
        compiler_params=pltpu.CompilerParams(dimension_semantics=("parallel",)),
    )(*args)
    return out3.reshape(B, 1)


def reference_forward(dynamic_seq, static_feats, p):
    """Pure-JAX reference mirroring PyTorch semantics (original gate order)."""
    B, T, _ = dynamic_seq.shape
    H = p["w_hh"].shape[1]
    h = jnp.zeros((B, H), jnp.float32)
    c = jnp.zeros((B, H), jnp.float32)
    for t in range(T):
        xt = dynamic_seq[:, t, :]
        gates = xt @ p["w_ih"].T + h @ p["w_hh"].T + p["b_ih"] + p["b_hh"]
        i_g = jax.nn.sigmoid(gates[:, 0 * H:1 * H])
        f_g = jax.nn.sigmoid(gates[:, 1 * H:2 * H])
        g_g = jnp.tanh(gates[:, 2 * H:3 * H])
        o_g = jax.nn.sigmoid(gates[:, 3 * H:4 * H])
        c = f_g * c + i_g * g_g
        h = o_g * jnp.tanh(c)
    s1 = jax.nn.relu(static_feats @ p["w_s1"].T + p["b_s1"])
    s2 = jax.nn.relu(s1 @ p["w_s2"].T + p["b_s2"])
    combined = jnp.concatenate([h, s2], axis=1)
    y = jax.nn.relu(combined @ p["w_fc1"].T + p["b_fc1"])
    y = y @ p["w_fc2"].T + p["b_fc2"]
    return jax.nn.relu(y)


if __name__ == "__main__":
    num_dynamic_features = 4
    lstm_hidden_size = 32
    fc_hidden_size = 32
    num_static_features = 6
    T = 8

    key = jax.random.PRNGKey(0)
    k_dyn, k_stat, k_par, k_dyn2, k_stat2 = jax.random.split(key, 5)

    params = init_params(k_par, num_dynamic_features, lstm_hidden_size,
                         fc_hidden_size, num_static_features)

    # --- small-shape check (B=2): single block, latency-bound path -------------
    B = 2
    dynamic_seq = jax.random.normal(k_dyn, (B, T, num_dynamic_features), jnp.float32)
    static_feats = jax.random.normal(k_stat, (B, num_static_features), jnp.float32)

    out = sales_predictor_forward(dynamic_seq, static_feats, params)
    out = jax.block_until_ready(out)
    ref = reference_forward(dynamic_seq, static_feats, params)
    assert out.shape == (B, 1)
    assert jnp.allclose(out, ref, atol=1e-4, rtol=1e-4), (out, ref)

    # --- multi-block check (B=64): exercises the batch grid + lane-dense output --
    B2 = 64
    dynamic_seq2 = jax.random.normal(k_dyn2, (B2, T, num_dynamic_features), jnp.float32)
    static_feats2 = jax.random.normal(k_stat2, (B2, num_static_features), jnp.float32)

    out2 = sales_predictor_forward(dynamic_seq2, static_feats2, params)
    out2 = jax.block_until_ready(out2)
    ref2 = reference_forward(dynamic_seq2, static_feats2, params)
    assert out2.shape == (B2, 1)
    assert jnp.allclose(out2, ref2, atol=1e-4, rtol=1e-4), (out2, ref2)

    print("KERNEL_OK")
</pallas_src>

<mosaic_0001>
module attributes {stable_mosaic.version = 11 : i64} {
  func.func @sales_predictor_kernel(%arg0: i32, %arg1: memref<8x2x4xf32, #tpu.memory_space<vmem>>, %arg2: memref<2x6xf32, #tpu.memory_space<vmem>>, %arg3: memref<4x128xf32, #tpu.memory_space<vmem>>, %arg4: memref<32x128xf32, #tpu.memory_space<vmem>>, %arg5: memref<1x128xf32, #tpu.memory_space<vmem>>, %arg6: memref<6x64xf32, #tpu.memory_space<vmem>>, %arg7: memref<1x64xf32, #tpu.memory_space<vmem>>, %arg8: memref<64x16xf32, #tpu.memory_space<vmem>>, %arg9: memref<1x16xf32, #tpu.memory_space<vmem>>, %arg10: memref<32x32xf32, #tpu.memory_space<vmem>>, %arg11: memref<16x32xf32, #tpu.memory_space<vmem>>, %arg12: memref<1x32xf32, #tpu.memory_space<vmem>>, %arg13: memref<1x32xf32, #tpu.memory_space<vmem>>, %arg14: memref<1x1xf32, #tpu.memory_space<vmem>>, %arg15: memref<1x1x2xf32, #tpu.memory_space<vmem>>) attributes {dimension_semantics = [#tpu.dimension_semantics<parallel>], iteration_bounds = array<i64: 1>, scalar_prefetch = 0 : i64, scratch_operands = 0 : i64, tpu.core_type = #tpu.core_type<tc>, window_params = [{transform_indices = @transform_0, window_bounds = array<i64: 8, 2, 4>}, {transform_indices = @transform_1, window_bounds = array<i64: 2, 6>}, {pipeline_mode = #tpu.pipeline_mode<synchronous>, transform_indices = @transform_2, window_bounds = array<i64: 4, 128>}, {pipeline_mode = #tpu.pipeline_mode<synchronous>, transform_indices = @transform_3, window_bounds = array<i64: 32, 128>}, {pipeline_mode = #tpu.pipeline_mode<synchronous>, transform_indices = @transform_4, window_bounds = array<i64: 1, 128>}, {pipeline_mode = #tpu.pipeline_mode<synchronous>, transform_indices = @transform_5, window_bounds = array<i64: 6, 64>}, {pipeline_mode = #tpu.pipeline_mode<synchronous>, transform_indices = @transform_6, window_bounds = array<i64: 1, 64>}, {pipeline_mode = #tpu.pipeline_mode<synchronous>, transform_indices = @transform_7, window_bounds = array<i64: 64, 16>}, {pipeline_mode = #tpu.pipeline_mode<synchronous>, transform_indices = @transform_8, window_bounds = array<i64: 1, 16>}, {pipeline_mode = #tpu.pipeline_mode<synchronous>, transform_indices = @transform_9, window_bounds = array<i64: 32, 32>}, {pipeline_mode = #tpu.pipeline_mode<synchronous>, transform_indices = @transform_10, window_bounds = array<i64: 16, 32>}, {pipeline_mode = #tpu.pipeline_mode<synchronous>, transform_indices = @transform_11, window_bounds = array<i64: 1, 32>}, {pipeline_mode = #tpu.pipeline_mode<synchronous>, transform_indices = @transform_12, window_bounds = array<i64: 1, 32>}, {pipeline_mode = #tpu.pipeline_mode<synchronous>, transform_indices = @transform_13, window_bounds = array<i64: 1, 1>}, {transform_indices = @transform_14, window_bounds = array<i64: 1, 1, 2>}]} {
    %c0 = arith.constant 0 : index
    %c0_0 = arith.constant 0 : index
    %0 = vector.load %arg4[%c0, %c0_0] : memref<32x128xf32, #tpu.memory_space<vmem>>, vector<32x128xf32>
    %c0_1 = arith.constant 0 : index
    %c0_2 = arith.constant 0 : index
    %c0_3 = arith.constant 0 : index
    %1 = vector.load %arg1[%c0_1, %c0_2, %c0_3] : memref<8x2x4xf32, #tpu.memory_space<vmem>>, vector<8x2x4xf32>
    %2 = vector.shape_cast %1 : vector<8x2x4xf32> to vector<16x4xf32>
    %c0_4 = arith.constant 0 : index
    %c0_5 = arith.constant 0 : index
    %3 = vector.load %arg3[%c0_4, %c0_5] : memref<4x128xf32, #tpu.memory_space<vmem>>, vector<4x128xf32>
    %cst = arith.constant dense<0.000000e+00> : vector<16x128xf32>
    %4 = tpu.matmul %2, %3, %cst {dimension_numbers = #tpu.dot_dimension_numbers<[1], [0], [0], [1], [0, 0, 1, 1], [], []>} : vector<16x4xf32>, vector<4x128xf32>, vector<16x128xf32> -> vector<16x128xf32>
    %c0_6 = arith.constant 0 : index
    %c0_7 = arith.constant 0 : index
    %5 = vector.load %arg5[%c0_6, %c0_7] : memref<1x128xf32, #tpu.memory_space<vmem>>, vector<1x128xf32>
    %6 = vector.broadcast %5 : vector<1x128xf32> to vector<16x128xf32>
    %7 = arith.addf %4, %6 : vector<16x128xf32>
    %cst_8 = arith.constant 0.000000e+00 : f32
    %8 = vector.broadcast %cst_8 : f32 to vector<2x32xf32>
    %cst_9 = arith.constant 0.000000e+00 : f32
    %9 = vector.broadcast %cst_9 : f32 to vector<2x32xf32>
    %10 = vector.extract_strided_slice %7 {offsets = [0, 0], sizes = [2, 128], strides = [1, 1]} : vector<16x128xf32> to vector<2x128xf32>
    %cst_10 = arith.constant dense<0.000000e+00> : vector<2x128xf32>
    %11 = tpu.matmul %8, %0, %cst_10 {dimension_numbers = #tpu.dot_dimension_numbers<[1], [0], [0], [1], [0, 0, 1, 1], [], []>} : vector<2x32xf32>, vector<32x128xf32>, vector<2x128xf32> -> vector<2x128xf32>
    %12 = arith.addf %10, %11 : vector<2x128xf32>
    %13 = vector.extract_strided_slice %12 {offsets = [0, 0], sizes = [2, 96], strides = [1, 1]} : vector<2x128xf32> to vector<2x96xf32>
    %14 = arith.negf %13 : vector<2x96xf32>
    %15 = math.exp %14 : vector<2x96xf32>
    %cst_11 = arith.constant 1.000000e+00 : f32
    %16 = vector.broadcast %cst_11 : f32 to vector<2x96xf32>
    %17 = arith.addf %16, %15 : vector<2x96xf32>
    %18 = arith.divf %16, %17 : vector<2x96xf32>
    %19 = vector.extract_strided_slice %12 {offsets = [0, 96], sizes = [2, 32], strides = [1, 1]} : vector<2x128xf32> to vector<2x32xf32>
    %20 = math.tanh %19 : vector<2x32xf32>
    %21 = vector.extract_strided_slice %18 {offsets = [0, 0], sizes = [2, 32], strides = [1, 1]} : vector<2x96xf32> to vector<2x32xf32>
    %22 = vector.extract_strided_slice %18 {offsets = [0, 32], sizes = [2, 32], strides = [1, 1]} : vector<2x96xf32> to vector<2x32xf32>
    %23 = vector.extract_strided_slice %18 {offsets = [0, 64], sizes = [2, 32], strides = [1, 1]} : vector<2x96xf32> to vector<2x32xf32>
    %24 = arith.mulf %22, %9 : vector<2x32xf32>
    %25 = arith.mulf %21, %20 : vector<2x32xf32>
    %26 = arith.addf %24, %25 : vector<2x32xf32>
    %27 = math.tanh %26 : vector<2x32xf32>
    %28 = arith.mulf %23, %27 : vector<2x32xf32>
    %29 = vector.extract_strided_slice %7 {offsets = [2, 0], sizes = [2, 128], strides = [1, 1]} : vector<16x128xf32> to vector<2x128xf32>
    %cst_12 = arith.constant dense<0.000000e+00> : vector<2x128xf32>
    %30 = tpu.matmul %28, %0, %cst_12 {dimension_numbers = #tpu.dot_dimension_numbers<[1], [0], [0], [1], [0, 0, 1, 1], [], []>} : vector<2x32xf32>, vector<32x128xf32>, vector<2x128xf32> -> vector<2x128xf32>
    %31 = arith.addf %29, %30 : vector<2x128xf32>
    %32 = vector.extract_strided_slice %31 {offsets = [0, 0], sizes = [2, 96], strides = [1, 1]} : vector<2x128xf32> to vector<2x96xf32>
    %33 = arith.negf %32 : vector<2x96xf32>
    %34 = math.exp %33 : vector<2x96xf32>
    %cst_13 = arith.constant 1.000000e+00 : f32
    %35 = vector.broadcast %cst_13 : f32 to vector<2x96xf32>
    %36 = arith.addf %35, %34 : vector<2x96xf32>
    %37 = arith.divf %35, %36 : vector<2x96xf32>
    %38 = vector.extract_strided_slice %31 {offsets = [0, 96], sizes = [2, 32], strides = [1, 1]} : vector<2x128xf32> to vector<2x32xf32>
    %39 = math.tanh %38 : vector<2x32xf32>
    %40 = vector.extract_strided_slice %37 {offsets = [0, 0], sizes = [2, 32], strides = [1, 1]} : vector<2x96xf32> to vector<2x32xf32>
    %41 = vector.extract_strided_slice %37 {offsets = [0, 32], sizes = [2, 32], strides = [1, 1]} : vector<2x96xf32> to vector<2x32xf32>
    %42 = vector.extract_strided_slice %37 {offsets = [0, 64], sizes = [2, 32], strides = [1, 1]} : vector<2x96xf32> to vector<2x32xf32>
    %43 = arith.mulf %41, %26 : vector<2x32xf32>
    %44 = arith.mulf %40, %39 : vector<2x32xf32>
    %45 = arith.addf %43, %44 : vector<2x32xf32>
    %46 = math.tanh %45 : vector<2x32xf32>
    %47 = arith.mulf %42, %46 : vector<2x32xf32>
    %48 = vector.extract_strided_slice %7 {offsets = [4, 0], sizes = [2, 128], strides = [1, 1]} : vector<16x128xf32> to vector<2x128xf32>
    %cst_14 = arith.constant dense<0.000000e+00> : vector<2x128xf32>
    %49 = tpu.matmul %47, %0, %cst_14 {dimension_numbers = #tpu.dot_dimension_numbers<[1], [0], [0], [1], [0, 0, 1, 1], [], []>} : vector<2x32xf32>, vector<32x128xf32>, vector<2x128xf32> -> vector<2x128xf32>
    %50 = arith.addf %48, %49 : vector<2x128xf32>
    %51 = vector.extract_strided_slice %50 {offsets = [0, 0], sizes = [2, 96], strides = [1, 1]} : vector<2x128xf32> to vector<2x96xf32>
    %52 = arith.negf %51 : vector<2x96xf32>
    %53 = math.exp %52 : vector<2x96xf32>
    %cst_15 = arith.constant 1.000000e+00 : f32
    %54 = vector.broadcast %cst_15 : f32 to vector<2x96xf32>
    %55 = arith.addf %54, %53 : vector<2x96xf32>
    %56 = arith.divf %54, %55 : vector<2x96xf32>
    %57 = vector.extract_strided_slice %50 {offsets = [0, 96], sizes = [2, 32], strides = [1, 1]} : vector<2x128xf32> to vector<2x32xf32>
    %58 = math.tanh %57 : vector<2x32xf32>
    %59 = vector.extract_strided_slice %56 {offsets = [0, 0], sizes = [2, 32], strides = [1, 1]} : vector<2x96xf32> to vector<2x32xf32>
    %60 = vector.extract_strided_slice %56 {offsets = [0, 32], sizes = [2, 32], strides = [1, 1]} : vector<2x96xf32> to vector<2x32xf32>
    %61 = vector.extract_strided_slice %56 {offsets = [0, 64], sizes = [2, 32], strides = [1, 1]} : vector<2x96xf32> to vector<2x32xf32>
    %62 = arith.mulf %60, %45 : vector<2x32xf32>
    %63 = arith.mulf %59, %58 : vector<2x32xf32>
    %64 = arith.addf %62, %63 : vector<2x32xf32>
    %65 = math.tanh %64 : vector<2x32xf32>
    %66 = arith.mulf %61, %65 : vector<2x32xf32>
    %67 = vector.extract_strided_slice %7 {offsets = [6, 0], sizes = [2, 128], strides = [1, 1]} : vector<16x128xf32> to vector<2x128xf32>
    %cst_16 = arith.constant dense<0.000000e+00> : vector<2x128xf32>
    %68 = tpu.matmul %66, %0, %cst_16 {dimension_numbers = #tpu.dot_dimension_numbers<[1], [0], [0], [1], [0, 0, 1, 1], [], []>} : vector<2x32xf32>, vector<32x128xf32>, vector<2x128xf32> -> vector<2x128xf32>
    %69 = arith.addf %67, %68 : vector<2x128xf32>
    %70 = vector.extract_strided_slice %69 {offsets = [0, 0], sizes = [2, 96], strides = [1, 1]} : vector<2x128xf32> to vector<2x96xf32>
    %71 = arith.negf %70 : vector<2x96xf32>
    %72 = math.exp %71 : vector<2x96xf32>
    %cst_17 = arith.constant 1.000000e+00 : f32
    %73 = vector.broadcast %cst_17 : f32 to vector<2x96xf32>
    %74 = arith.addf %73, %72 : vector<2x96xf32>
    %75 = arith.divf %73, %74 : vector<2x96xf32>
    %76 = vector.extract_strided_slice %69 {offsets = [0, 96], sizes = [2, 32], strides = [1, 1]} : vector<2x128xf32> to vector<2x32xf32>
    %77 = math.tanh %76 : vector<2x32xf32>
    %78 = vector.extract_strided_slice %75 {offsets = [0, 0], sizes = [2, 32], strides = [1, 1]} : vector<2x96xf32> to vector<2x32xf32>
    %79 = vector.extract_strided_slice %75 {offsets = [0, 32], sizes = [2, 32], strides = [1, 1]} : vector<2x96xf32> to vector<2x32xf32>
    %80 = vector.extract_strided_slice %75 {offsets = [0, 64], sizes = [2, 32], strides = [1, 1]} : vector<2x96xf32> to vector<2x32xf32>
    %81 = arith.mulf %79, %64 : vector<2x32xf32>
    %82 = arith.mulf %78, %77 : vector<2x32xf32>
    %83 = arith.addf %81, %82 : vector<2x32xf32>
    %84 = math.tanh %83 : vector<2x32xf32>
    %85 = arith.mulf %80, %84 : vector<2x32xf32>
    %86 = vector.extract_strided_slice %7 {offsets = [8, 0], sizes = [2, 128], strides = [1, 1]} : vector<16x128xf32> to vector<2x128xf32>
    %cst_18 = arith.constant dense<0.000000e+00> : vector<2x128xf32>
    %87 = tpu.matmul %85, %0, %cst_18 {dimension_numbers = #tpu.dot_dimension_numbers<[1], [0], [0], [1], [0, 0, 1, 1], [], []>} : vector<2x32xf32>, vector<32x128xf32>, vector<2x128xf32> -> vector<2x128xf32>
    %88 = arith.addf %86, %87 : vector<2x128xf32>
    %89 = vector.extract_strided_slice %88 {offsets = [0, 0], sizes = [2, 96], strides = [1, 1]} : vector<2x128xf32> to vector<2x96xf32>
    %90 = arith.negf %89 : vector<2x96xf32>
    %91 = math.exp %90 : vector<2x96xf32>
    %cst_19 = arith.constant 1.000000e+00 : f32
    %92 = vector.broadcast %cst_19 : f32 to vector<2x96xf32>
    %93 = arith.addf %92, %91 : vector<2x96xf32>
    %94 = arith.divf %92, %93 : vector<2x96xf32>
    %95 = vector.extract_strided_slice %88 {offsets = [0, 96], sizes = [2, 32], strides = [1, 1]} : vector<2x128xf32> to vector<2x32xf32>
    %96 = math.tanh %95 : vector<2x32xf32>
    %97 = vector.extract_strided_slice %94 {offsets = [0, 0], sizes = [2, 32], strides = [1, 1]} : vector<2x96xf32> to vector<2x32xf32>
    %98 = vector.extract_strided_slice %94 {offsets = [0, 32], sizes = [2, 32], strides = [1, 1]} : vector<2x96xf32> to vector<2x32xf32>
    %99 = vector.extract_strided_slice %94 {offsets = [0, 64], sizes = [2, 32], strides = [1, 1]} : vector<2x96xf32> to vector<2x32xf32>
    %100 = arith.mulf %98, %83 : vector<2x32xf32>
    %101 = arith.mulf %97, %96 : vector<2x32xf32>
    %102 = arith.addf %100, %101 : vector<2x32xf32>
    %103 = math.tanh %102 : vector<2x32xf32>
    %104 = arith.mulf %99, %103 : vector<2x32xf32>
    %105 = vector.extract_strided_slice %7 {offsets = [10, 0], sizes = [2, 128], strides = [1, 1]} : vector<16x128xf32> to vector<2x128xf32>
    %cst_20 = arith.constant dense<0.000000e+00> : vector<2x128xf32>
    %106 = tpu.matmul %104, %0, %cst_20 {dimension_numbers = #tpu.dot_dimension_numbers<[1], [0], [0], [1], [0, 0, 1, 1], [], []>} : vector<2x32xf32>, vector<32x128xf32>, vector<2x128xf32> -> vector<2x128xf32>
    %107 = arith.addf %105, %106 : vector<2x128xf32>
    %108 = vector.extract_strided_slice %107 {offsets = [0, 0], sizes = [2, 96], strides = [1, 1]} : vector<2x128xf32> to vector<2x96xf32>
    %109 = arith.negf %108 : vector<2x96xf32>
    %110 = math.exp %109 : vector<2x96xf32>
    %cst_21 = arith.constant 1.000000e+00 : f32
    %111 = vector.broadcast %cst_21 : f32 to vector<2x96xf32>
    %112 = arith.addf %111, %110 : vector<2x96xf32>
    %113 = arith.divf %111, %112 : vector<2x96xf32>
    %114 = vector.extract_strided_slice %107 {offsets = [0, 96], sizes = [2, 32], strides = [1, 1]} : vector<2x128xf32> to vector<2x32xf32>
    %115 = math.tanh %114 : vector<2x32xf32>
    %116 = vector.extract_strided_slice %113 {offsets = [0, 0], sizes = [2, 32], strides = [1, 1]} : vector<2x96xf32> to vector<2x32xf32>
    %117 = vector.extract_strided_slice %113 {offsets = [0, 32], sizes = [2, 32], strides = [1, 1]} : vector<2x96xf32> to vector<2x32xf32>
    %118 = vector.extract_strided_slice %113 {offsets = [0, 64], sizes = [2, 32], strides = [1, 1]} : vector<2x96xf32> to vector<2x32xf32>
    %119 = arith.mulf %117, %102 : vector<2x32xf32>
    %120 = arith.mulf %116, %115 : vector<2x32xf32>
    %121 = arith.addf %119, %120 : vector<2x32xf32>
    %122 = math.tanh %121 : vector<2x32xf32>
    %123 = arith.mulf %118, %122 : vector<2x32xf32>
    %124 = vector.extract_strided_slice %7 {offsets = [12, 0], sizes = [2, 128], strides = [1, 1]} : vector<16x128xf32> to vector<2x128xf32>
    %cst_22 = arith.constant dense<0.000000e+00> : vector<2x128xf32>
    %125 = tpu.matmul %123, %0, %cst_22 {dimension_numbers = #tpu.dot_dimension_numbers<[1], [0], [0], [1], [0, 0, 1, 1], [], []>} : vector<2x32xf32>, vector<32x128xf32>, vector<2x128xf32> -> vector<2x128xf32>
    %126 = arith.addf %124, %125 : vector<2x128xf32>
    %127 = vector.extract_strided_slice %126 {offsets = [0, 0], sizes = [2, 96], strides = [1, 1]} : vector<2x128xf32> to vector<2x96xf32>
    %128 = arith.negf %127 : vector<2x96xf32>
    %129 = math.exp %128 : vector<2x96xf32>
    %cst_23 = arith.constant 1.000000e+00 : f32
    %130 = vector.broadcast %cst_23 : f32 to vector<2x96xf32>
    %131 = arith.addf %130, %129 : vector<2x96xf32>
    %132 = arith.divf %130, %131 : vector<2x96xf32>
    %133 = vector.extract_strided_slice %126 {offsets = [0, 96], sizes = [2, 32], strides = [1, 1]} : vector<2x128xf32> to vector<2x32xf32>
    %134 = math.tanh %133 : vector<2x32xf32>
    %135 = vector.extract_strided_slice %132 {offsets = [0, 0], sizes = [2, 32], strides = [1, 1]} : vector<2x96xf32> to vector<2x32xf32>
    %136 = vector.extract_strided_slice %132 {offsets = [0, 32], sizes = [2, 32], strides = [1, 1]} : vector<2x96xf32> to vector<2x32xf32>
    %137 = vector.extract_strided_slice %132 {offsets = [0, 64], sizes = [2, 32], strides = [1, 1]} : vector<2x96xf32> to vector<2x32xf32>
    %138 = arith.mulf %136, %121 : vector<2x32xf32>
    %139 = arith.mulf %135, %134 : vector<2x32xf32>
    %140 = arith.addf %138, %139 : vector<2x32xf32>
    %141 = math.tanh %140 : vector<2x32xf32>
    %142 = arith.mulf %137, %141 : vector<2x32xf32>
    %143 = vector.extract_strided_slice %7 {offsets = [14, 0], sizes = [2, 128], strides = [1, 1]} : vector<16x128xf32> to vector<2x128xf32>
    %cst_24 = arith.constant dense<0.000000e+00> : vector<2x128xf32>
    %144 = tpu.matmul %142, %0, %cst_24 {dimension_numbers = #tpu.dot_dimension_numbers<[1], [0], [0], [1], [0, 0, 1, 1], [], []>} : vector<2x32xf32>, vector<32x128xf32>, vector<2x128xf32> -> vector<2x128xf32>
    %145 = arith.addf %143, %144 : vector<2x128xf32>
    %146 = vector.extract_strided_slice %145 {offsets = [0, 0], sizes = [2, 96], strides = [1, 1]} : vector<2x128xf32> to vector<2x96xf32>
    %147 = arith.negf %146 : vector<2x96xf32>
    %148 = math.exp %147 : vector<2x96xf32>
    %cst_25 = arith.constant 1.000000e+00 : f32
    %149 = vector.broadcast %cst_25 : f32 to vector<2x96xf32>
    %150 = arith.addf %149, %148 : vector<2x96xf32>
    %151 = arith.divf %149, %150 : vector<2x96xf32>
    %152 = vector.extract_strided_slice %145 {offsets = [0, 96], sizes = [2, 32], strides = [1, 1]} : vector<2x128xf32> to vector<2x32xf32>
    %153 = math.tanh %152 : vector<2x32xf32>
    %154 = vector.extract_strided_slice %151 {offsets = [0, 0], sizes = [2, 32], strides = [1, 1]} : vector<2x96xf32> to vector<2x32xf32>
    %155 = vector.extract_strided_slice %151 {offsets = [0, 32], sizes = [2, 32], strides = [1, 1]} : vector<2x96xf32> to vector<2x32xf32>
    %156 = vector.extract_strided_slice %151 {offsets = [0, 64], sizes = [2, 32], strides = [1, 1]} : vector<2x96xf32> to vector<2x32xf32>
    %157 = arith.mulf %155, %140 : vector<2x32xf32>
    %158 = arith.mulf %154, %153 : vector<2x32xf32>
    %159 = arith.addf %157, %158 : vector<2x32xf32>
    %160 = math.tanh %159 : vector<2x32xf32>
    %161 = arith.mulf %156, %160 : vector<2x32xf32>
    %c0_26 = arith.constant 0 : index
    %c0_27 = arith.constant 0 : index
    %162 = vector.load %arg2[%c0_26, %c0_27] : memref<2x6xf32, #tpu.memory_space<vmem>>, vector<2x6xf32>
    %c0_28 = arith.constant 0 : index
    %c0_29 = arith.constant 0 : index
    %163 = vector.load %arg6[%c0_28, %c0_29] : memref<6x64xf32, #tpu.memory_space<vmem>>, vector<6x64xf32>
    %cst_30 = arith.constant dense<0.000000e+00> : vector<2x64xf32>
    %164 = tpu.matmul %162, %163, %cst_30 {dimension_numbers = #tpu.dot_dimension_numbers<[1], [0], [0], [1], [0, 0, 1, 1], [], []>} : vector<2x6xf32>, vector<6x64xf32>, vector<2x64xf32> -> vector<2x64xf32>
    %c0_31 = arith.constant 0 : index
    %c0_32 = arith.constant 0 : index
    %165 = vector.load %arg7[%c0_31, %c0_32] : memref<1x64xf32, #tpu.memory_space<vmem>>, vector<1x64xf32>
    %166 = vector.broadcast %165 : vector<1x64xf32> to vector<2x64xf32>
    %167 = arith.addf %164, %166 : vector<2x64xf32>
    %cst_33 = arith.constant 0.000000e+00 : f32
    %168 = vector.broadcast %cst_33 : f32 to vector<2x64xf32>
    %169 = arith.maximumf %167, %168 : vector<2x64xf32>
    %c0_34 = arith.constant 0 : index
    %c0_35 = arith.constant 0 : index
    %170 = vector.load %arg8[%c0_34, %c0_35] : memref<64x16xf32, #tpu.memory_space<vmem>>, vector<64x16xf32>
    %cst_36 = arith.constant dense<0.000000e+00> : vector<2x16xf32>
    %171 = tpu.matmul %169, %170, %cst_36 {dimension_numbers = #tpu.dot_dimension_numbers<[1], [0], [0], [1], [0, 0, 1, 1], [], []>} : vector<2x64xf32>, vector<64x16xf32>, vector<2x16xf32> -> vector<2x16xf32>
    %c0_37 = arith.constant 0 : index
    %c0_38 = arith.constant 0 : index
    %172 = vector.load %arg9[%c0_37, %c0_38] : memref<1x16xf32, #tpu.memory_space<vmem>>, vector<1x16xf32>
    %173 = vector.broadcast %172 : vector<1x16xf32> to vector<2x16xf32>
    %174 = arith.addf %171, %173 : vector<2x16xf32>
    %cst_39 = arith.constant 0.000000e+00 : f32
    %175 = vector.broadcast %cst_39 : f32 to vector<2x16xf32>
    %176 = arith.maximumf %174, %175 : vector<2x16xf32>
    %c0_40 = arith.constant 0 : index
    %c0_41 = arith.constant 0 : index
    %177 = vector.load %arg10[%c0_40, %c0_41] : memref<32x32xf32, #tpu.memory_space<vmem>>, vector<32x32xf32>
    %cst_42 = arith.constant dense<0.000000e+00> : vector<2x32xf32>
    %178 = tpu.matmul %161, %177, %cst_42 {dimension_numbers = #tpu.dot_dimension_numbers<[1], [0], [0], [1], [0, 0, 1, 1], [], []>} : vector<2x32xf32>, vector<32x32xf32>, vector<2x32xf32> -> vector<2x32xf32>
    %c0_43 = arith.constant 0 : index
    %c0_44 = arith.constant 0 : index
    %179 = vector.load %arg11[%c0_43, %c0_44] : memref<16x32xf32, #tpu.memory_space<vmem>>, vector<16x32xf32>
    %cst_45 = arith.constant dense<0.000000e+00> : vector<2x32xf32>
    %180 = tpu.matmul %176, %179, %cst_45 {dimension_numbers = #tpu.dot_dimension_numbers<[1], [0], [0], [1], [0, 0, 1, 1], [], []>} : vector<2x16xf32>, vector<16x32xf32>, vector<2x32xf32> -> vector<2x32xf32>
    %181 = arith.addf %178, %180 : vector<2x32xf32>
    %c0_46 = arith.constant 0 : index
    %c0_47 = arith.constant 0 : index
    %182 = vector.load %arg12[%c0_46, %c0_47] : memref<1x32xf32, #tpu.memory_space<vmem>>, vector<1x32xf32>
    %183 = vector.broadcast %182 : vector<1x32xf32> to vector<2x32xf32>
    %184 = arith.addf %181, %183 : vector<2x32xf32>
    %cst_48 = arith.constant 0.000000e+00 : f32
    %185 = vector.broadcast %cst_48 : f32 to vector<2x32xf32>
    %186 = arith.maximumf %184, %185 : vector<2x32xf32>
    %c0_49 = arith.constant 0 : index
    %c0_50 = arith.constant 0 : index
    %187 = vector.load %arg13[%c0_49, %c0_50] : memref<1x32xf32, #tpu.memory_space<vmem>>, vector<1x32xf32>
    %cst_51 = arith.constant dense<0.000000e+00> : vector<1x2xf32>
    %188 = tpu.matmul %187, %186, %cst_51 {dimension_numbers = #tpu.dot_dimension_numbers<[1], [1], [0], [0], [0, 0, 1, 0], [], []>} : vector<1x32xf32>, vector<2x32xf32>, vector<1x2xf32> -> vector<1x2xf32>
    %c0_52 = arith.constant 0 : index
    %c0_53 = arith.constant 0 : index
    %189 = vector.load %arg14[%c0_52, %c0_53] : memref<1x1xf32, #tpu.memory_space<vmem>>, vector<1x1xf32>
    %190 = vector.broadcast %189 : vector<1x1xf32> to vector<1x2xf32>
    %191 = arith.addf %188, %190 : vector<1x2xf32>
    %cst_54 = arith.constant 0.000000e+00 : f32
    %192 = vector.broadcast %cst_54 : f32 to vector<1x2xf32>
    %193 = arith.maximumf %191, %192 : vector<1x2xf32>
    %194 = vector.shape_cast %193 : vector<1x2xf32> to vector<1x1x2xf32>
    %c0_55 = arith.constant 0 : index
    %c0_56 = arith.constant 0 : index
    %c0_57 = arith.constant 0 : index
    %195 = vector.load %arg15[%c0_55, %c0_56, %c0_57] : memref<1x1x2xf32, #tpu.memory_space<vmem>>, vector<1x1x2xf32>
    tpu.vector_store %arg15[%c0_55, %c0_56, %c0_57], %194 {strides = array<i32>} : memref<1x1x2xf32, #tpu.memory_space<vmem>>, vector<1x1x2xf32>,
    return
  }
  func.func @transform_0(%arg0: i32) -> (i32, i32, i32) {
    %c0_i32 = arith.constant 0 : i32
    %c0_i32_0 = arith.constant 0 : i32
    %c0_i32_1 = arith.constant 0 : i32
    return %c0_i32, %arg0, %c0_i32_0 : i32, i32, i32
  }
  func.func @transform_1(%arg0: i32) -> (i32, i32) {
    %c0_i32 = arith.constant 0 : i32
    %c0_i32_0 = arith.constant 0 : i32
    return %arg0, %c0_i32 : i32, i32
  }
  func.func @transform_2(%arg0: i32) -> (i32, i32) {
    %c0_i32 = arith.constant 0 : i32
    %c0_i32_0 = arith.constant 0 : i32
    %c0_i32_1 = arith.constant 0 : i32
    return %c0_i32, %c0_i32_0 : i32, i32
  }
  func.func @transform_3(%arg0: i32) -> (i32, i32) {
    %c0_i32 = arith.constant 0 : i32
    %c0_i32_0 = arith.constant 0 : i32
    %c0_i32_1 = arith.constant 0 : i32
    return %c0_i32, %c0_i32_0 : i32, i32
  }
  func.func @transform_4(%arg0: i32) -> (i32, i32) {
    %c0_i32 = arith.constant 0 : i32
    %c0_i32_0 = arith.constant 0 : i32
    %c0_i32_1 = arith.constant 0 : i32
    return %c0_i32, %c0_i32_0 : i32, i32
  }
  func.func @transform_5(%arg0: i32) -> (i32, i32) {
    %c0_i32 = arith.constant 0 : i32
    %c0_i32_0 = arith.constant 0 : i32
    %c0_i32_1 = arith.constant 0 : i32
    return %c0_i32, %c0_i32_0 : i32, i32
  }
  func.func @transform_6(%arg0: i32) -> (i32, i32) {
    %c0_i32 = arith.constant 0 : i32
    %c0_i32_0 = arith.constant 0 : i32
    %c0_i32_1 = arith.constant 0 : i32
    return %c0_i32, %c0_i32_0 : i32, i32
  }
  func.func @transform_7(%arg0: i32) -> (i32, i32) {
    %c0_i32 = arith.constant 0 : i32
    %c0_i32_0 = arith.constant 0 : i32
    %c0_i32_1 = arith.constant 0 : i32
    return %c0_i32, %c0_i32_0 : i32, i32
  }
  func.func @transform_8(%arg0: i32) -> (i32, i32) {
    %c0_i32 = arith.constant 0 : i32
    %c0_i32_0 = arith.constant 0 : i32
    %c0_i32_1 = arith.constant 0 : i32
    return %c0_i32, %c0_i32_0 : i32, i32
  }
  func.func @transform_9(%arg0: i32) -> (i32, i32) {
    %c0_i32 = arith.constant 0 : i32
    %c0_i32_0 = arith.constant 0 : i32
    %c0_i32_1 = arith.constant 0 : i32
    return %c0_i32, %c0_i32_0 : i32, i32
  }
  func.func @transform_10(%arg0: i32) -> (i32, i32) {
    %c0_i32 = arith.constant 0 : i32
    %c0_i32_0 = arith.constant 0 : i32
    %c0_i32_1 = arith.constant 0 : i32
    return %c0_i32, %c0_i32_0 : i32, i32
  }
  func.func @transform_11(%arg0: i32) -> (i32, i32) {
    %c0_i32 = arith.constant 0 : i32
    %c0_i32_0 = arith.constant 0 : i32
    %c0_i32_1 = arith.constant 0 : i32
    return %c0_i32, %c0_i32_0 : i32, i32
  }
  func.func @transform_12(%arg0: i32) -> (i32, i32) {
    %c0_i32 = arith.constant 0 : i32
    %c0_i32_0 = arith.constant 0 : i32
    %c0_i32_1 = arith.constant 0 : i32
    return %c0_i32, %c0_i32_0 : i32, i32
  }
  func.func @transform_13(%arg0: i32) -> (i32, i32) {
    %c0_i32 = arith.constant 0 : i32
    %c0_i32_0 = arith.constant 0 : i32
    %c0_i32_1 = arith.constant 0 : i32
    return %c0_i32, %c0_i32_0 : i32, i32
  }
  func.func @transform_14(%arg0: i32) -> (i32, i32, i32) {
    %c0_i32 = arith.constant 0 : i32
    %c0_i32_0 = arith.constant 0 : i32
    %c0_i32_1 = arith.constant 0 : i32
    return %arg0, %c0_i32, %c0_i32_0 : i32, i32, i32
  }
}

</mosaic_0001>

<bundles_post_ra>
// kernel: tpu_custom_call.1
= control target key start
LH: loop header
LB: loop body
LE: loop exit
PB: predicated region body
PF: predicated region fallthrough
CT: control target
= control target key end

     0   :  { %s1275_s0 = inlined_call_operand.vmem [shape: f32[8,2,4], index: 0, kind: input, shape index: {}]   ;;  %s1276_s1 = inlined_call_operand.vmem [shape: f32[2,6], index: 1, kind: input, shape index: {}]   ;;  %s1277_s2 = inlined_call_operand.vmem [shape: f32[4,128], index: 2, kind: input, shape index: {}]   ;;  %s1278_s3 = inlined_call_operand.vmem [shape: f32[32,128], index: 3, kind: input, shape index: {}]   ;;  %s1279_s4 = inlined_call_operand.vmem [shape: f32[1,128], index: 4, kind: input, shape index: {}]   ;;  %s1280_s5 = inlined_call_operand.vmem [shape: f32[6,64], index: 5, kind: input, shape index: {}]   ;;  %s1281_s6 = inlined_call_operand.hbm [shape: f32[1,64], index: 6, kind: input, shape index: {}]   ;;  %s1282_s7 = inlined_call_operand.vmem [shape: f32[64,16], index: 7, kind: input, shape index: {}]   ;;  %s1283_s8 = inlined_call_operand.vmem [shape: f32[1,16], index: 8, kind: input, shape index: {}]   ;;  %s1284_s9 = inlined_call_operand.vmem [shape: f32[32,32], index: 9, kind: input, shape index: {}]   ;;  %s1285_s10 = inlined_call_operand.vmem [shape: f32[16,32], index: 10, kind: input, shape index: {}]   ;;  %s1286_s11 = inlined_call_operand.vmem [shape: f32[1,32], index: 11, kind: input, shape index: {}]   ;;  %s1287_s12 = inlined_call_operand.vmem [shape: f32[1,32], index: 12, kind: input, shape index: {}]   ;;  %s1288_s13 = inlined_call_operand.<no memory space> [shape: f32[1,1], index: 13, kind: input, shape index: {}]   ;;  %s1289_s14 = inlined_call_operand.hbm [shape: f32[1,1,2], index: 14, kind: output, shape index: {}]  }
   0x1   :  { %v19_v0 = vstv %s1288_s13 }
   0x2   :  { %20 = vst [vmem:[#allocation2] sm:$0x1] %v19_v0 }
   0x3   :  { %21 = vsyncpa [#allocation4], 0 }
   0x4   :  { %22 = vsyncpa [#allocation5], 0  ;;  %s40_s17 = sshll.u32 %s1281_s6, 4  ;;  %s1026_s18 = smov [#allocation3]   ;;  %s41_s17 = int_to_ptr.hbm [resolvable:$true] %s40_s17 }
   0x5   :  { %s42_s19 = sshll.u32 %s1026_s18, 4  ;;  %s43_s19 = int_to_ptr.vmem [resolvable:$true] %s42_s19 }
   0x6   :  { %45 = dma.hbm_to_vmem [thread:$0]  %s41_s17, 16, %s43_s19, [#allocation4]  }
   0x7   :  { %1022 = dma.done.wait [#allocation4], 16  }
   0x8   :  { %1023 = vsyncadd [#allocation4], 4294967280  ;;  %vm111_vm0 = vcmask 1043456   ;;  %v67_v1 = vld [vmem:[%s1278_s3 + $0x18] sm:$0xff]  ;;  %v66_v2 = vld [vmem:[%s1278_s3 + $0x10] sm:$0xff]  ;;  %v1027_v10 = vmov 0.0  }
   0x9   :  { %v76_v3 = vld [vmem:[%s1277_s2] sm:$0xf]  ;;  %154 = vmatpush.msra.mxu1 %v67_v1  ;;  %v65_v4 = vld [vmem:[%s1278_s3 + $0x8] sm:$0xff]  ;;  %v70_v7 = vld [vmem:[%s1275_s0 + $0x4] sm:$0x3]  ;;  %217 = vmatpush.msra.mxu2 %v67_v1  ;;  %vm106_vm1 = vcmask 31744  }
   0xa   :  { %873 = vmatpush.msk.msra.mxu0 %vm111_vm0, %v76_v3  ;;  %v68_v5 = vld [vmem:[%s1275_s0] sm:$0x3]  ;;  %v69_v6 = vld [vmem:[%s1275_s0 + $0x2] sm:$0x3]  ;;  %v71_v8 = vld [vmem:[%s1275_s0 + $0x6] sm:$0x3]  ;;  %287 = vmatpush.msra.mxu3 %v67_v1 }
   0xb   :  { %89 = vst [vmem:[#allocation1] ss:$4 sm:$0xff] %v68_v5  ;;  %155 = vmatpush.msra.mxu1 %v66_v2  ;;  %v64_v9 = vld [vmem:[%s1278_s3] sm:$0xff]  ;;  %218 = vmatpush.msra.mxu2 %v66_v2  ;;  %s1028_s20 = smov 32   ;;  %vm138_vm6 = vcmask 261120   ;;  %s1031_s17 = smov [#allocation6]  }
   0xc   :  { %91 = vst [vmem:[#allocation1 + $0x1] ss:$4 sm:$0xff] %v69_v6  ;;  %563 = vmatpush.msrb.mxu0 %v67_v1  ;;  %288 = vmatpush.msra.mxu3 %v66_v2  ;;  %v1144_v12 = vld [vmem:[%s1279_s4] ss:$0 sm:$0xff]  ;;  %s1029_s4 = smov 64   ;;  %s861_s18 = sshll.u32 %s1031_s17, 4  ;;  %s862_s18 = int_to_ptr.vmem [resolvable:$true] %s861_s18 }
   0xd   :  { %93 = vst [vmem:[#allocation1 + $0x2] ss:$4 sm:$0xff] %v70_v7  ;;  %156 = vmatpush.msra.mxu1 %v65_v4  ;;  %219 = vmatpush.msra.mxu2 %v65_v4 }
   0xe   :  { %95 = vst [vmem:[#allocation1 + $0x3] ss:$4 sm:$0xff] %v71_v8  ;;  %564 = vmatpush.msrb.mxu0 %v66_v2  ;;  %289 = vmatpush.msra.mxu3 %v65_v4 }
   0xf   :  { %157 = vmatpush.msra.mxu1 %v64_v9  ;;  %220 = vmatpush.msra.mxu2 %v64_v9 }
  0x10   :  { %565 = vmatpush.msrb.mxu0 %v65_v4  ;;  %158 = vmatmul.f32.vlgmr.msra.gmra.mxu1 %v1027_v10 }
  0x11   :  { %290 = vmatpush.msra.mxu3 %v64_v9  ;;  %357 = vmatpush.msrb.mxu1 %v67_v1 }
  0x12   :  { %427 = vmatpush.msrb.mxu2 %v67_v1  ;;  %566 = vmatpush.msrb.mxu0 %v64_v9 }
  0x13   :  { %493 = vmatpush.msrb.mxu3 %v67_v1  ;;  %358 = vmatpush.msrb.mxu1 %v66_v2 }
  0x14   :  { %428 = vmatpush.msrb.mxu2 %v66_v2 }
  0x15   :  { %v104_v11 = vld.sshfl [vmem:[#allocation1] sm:$0xff pattern:$0x73625140]  ;;  %494 = vmatpush.msrb.mxu3 %v66_v2  ;;  %359 = vmatpush.msrb.mxu1 %v65_v4 }
  0x16   :  { %874 = vmatmul.msk.f32.vlgmr.msra.gmra.mxu0 %vm106_vm1, %v104_v11  ;;  %429 = vmatpush.msrb.mxu2 %v65_v4 }
  0x17   :  { %495 = vmatpush.msrb.mxu3 %v65_v4  ;;  %360 = vmatpush.msrb.mxu1 %v64_v9 }
  0x18   :  { %430 = vmatpush.msrb.mxu2 %v64_v9 }
  0x19   :  { %496 = vmatpush.msrb.mxu3 %v64_v9  ;;  %633 = vmatpush.msra.mxu1 %v67_v1 }
  0x1b   :  { %634 = vmatpush.msra.mxu1 %v66_v2 }
  0x1d   :  { %635 = vmatpush.msra.mxu1 %v65_v4 }
  0x1f   :  { %636 = vmatpush.msra.mxu1 %v64_v9 }
  0x8d   :  { %v159_v14 = vpop.f32.mrf.mxu1 }
  0x93   :  { %v132_v13 = vpop.f32.mrf.mxu0 }
  0x94   :  { %v1147_v15 = vadd.f32 %v1144_v12, %v132_v13 }
  0x96   :  { %v162_v16 = vadd.f32 %v159_v14, %v1147_v15 }
  0x98   :  { %910 = vtanh.f32 %v162_v16  ;;  %v876_v18 = vmul.f32 -1.442695, %v162_v16 }
  0x9a   :  { %912 = vpow2.f32 %v876_v18 }
  0x9e   :  { %v911_v17 = vpop.eup %910 }
  0x9f   :  { %185 = vrot.lane.b32.xlu0 %v911_v17, %s1028_s20 }
  0xa0   :  { %v913_v19 = vpop.eup %912 }
  0xa1   :  { %v166_v20 = vadd.f32 1.0, %v913_v19 }
  0xa3   :  { %914 = vrcp.f32 %v166_v20  ;;  %v178_v26 = vand.u32 2147483648, %v166_v20  ;;  %vm172_vm3 = vweird.f32 %v166_v20  ;;  %v176_v27 = vand.u32 2147483647, %v166_v20 }
  0xa5   :  { %v179_v29 = vor.u32 1.1754944e-38, %v178_v26  ;;  %vm177_vm5 = vcmp.eq.f32.partialorder %v176_v27, 8.507059e+37 }
  0xa9   :  { %v915_v21 = vpop.eup %914 }
  0xaa   :  { %v168_v22 = vmul.f32 %v915_v21, %v166_v20  ;;  %vm173_vm2 = vweird.f32 %v915_v21 }
  0xab   :  { %vm174_vm4 = vmor %vm172_vm3, %vm173_vm2 }
  0xac   :  { %v169_v23 = vsub.f32 1.0, %v168_v22 }
  0xae   :  { %v170_v24 = vmul.f32 %v915_v21, %v169_v23 }
  0xb0   :  { %v171_v25 = vadd.f32 %v915_v21, %v170_v24 }
  0xb2   :  { %v175_v28 = vsel %vm174_vm4, %v915_v21, %v171_v25 }
  0xb3   :  { %v180_v31 = vsel %vm177_vm5, %v179_v29, %v175_v28 }
  0xb4   :  { %v183_v33 = vmul.f32 0.0, %v180_v31 }
 0x111   :  { %v186_v30 = vpop.permute.xlu0 %185 }
 0x112   :  { %v188_v32 = vmul.f32 %v186_v30, %v180_v31 }
 0x114   :  { %190 = vrot.lane.b32.xlu0 %v188_v32, %s1028_s20 }
 0x186   :  { %v191_v34 = vpop.permute.xlu0 %190 }
 0x187   :  { %v193_v35 = vadd.f32 %v191_v34, %v183_v33 }
 0x189   :  { %916 = vtanh.f32 %v193_v35  ;;  %v250_v59 = vrot.slane %v193_v35, 6 }
 0x18f   :  { %v917_v36 = vpop.eup %916 }
 0x190   :  { %196 = vrot.lane.b32.xlu1 %v917_v36, %s1028_s20 }
 0x202   :  { %v197_v37 = vpop.permute.xlu1 %196 }
 0x203   :  { %v199_v38 = vmul.f32 %v197_v37, %v180_v31 }
 0x205   :  { %201 = vrot.lane.b32.xlu1 %v199_v38, %s1029_s4 }
 0x277   :  { %v202_v39 = vpop.permute.xlu1 %201 }
 0x278   :  { %877 = vmatmul.msk.f32.vlgmr.msra.gmra.mxu2 %vm138_vm6, %v202_v39 }
 0x2fb   :  { %v222_v40 = vpop.f32.mrf.mxu2 }
 0x2fc   :  { %v226_v41 = vrot.slane %v222_v40, 6 }
 0x2fe   :  { %v228_v42 = vadd.f32 %v226_v41, %v1147_v15 }
 0x300   :  { %918 = vtanh.f32 %v228_v42  ;;  %v878_v44 = vmul.f32 -1.442695, %v228_v42 }
 0x302   :  { %920 = vpow2.f32 %v878_v44 }
 0x306   :  { %v919_v43 = vpop.eup %918 }
 0x307   :  { %254 = vrot.lane.b32.xlu2 %v919_v43, %s1028_s20 }
 0x308   :  { %v921_v45 = vpop.eup %920 }
 0x309   :  { %v232_v46 = vadd.f32 1.0, %v921_v45 }
 0x30b   :  { %922 = vrcp.f32 %v232_v46  ;;  %v244_v52 = vand.u32 2147483648, %v232_v46  ;;  %vm238_vm8 = vweird.f32 %v232_v46  ;;  %v242_v53 = vand.u32 2147483647, %v232_v46 }
 0x30d   :  { %v245_v55 = vor.u32 1.1754944e-38, %v244_v52  ;;  %vm243_vm10 = vcmp.eq.f32.partialorder %v242_v53, 8.507059e+37 }
 0x311   :  { %v923_v47 = vpop.eup %922 }
 0x312   :  { %v234_v48 = vmul.f32 %v923_v47, %v232_v46  ;;  %vm239_vm7 = vweird.f32 %v923_v47 }
 0x313   :  { %vm240_vm9 = vmor %vm238_vm8, %vm239_vm7 }
 0x314   :  { %v235_v49 = vsub.f32 1.0, %v234_v48 }
 0x316   :  { %v236_v50 = vmul.f32 %v923_v47, %v235_v49 }
 0x318   :  { %v237_v51 = vadd.f32 %v923_v47, %v236_v50 }
 0x31a   :  { %v241_v54 = vsel %vm240_vm9, %v923_v47, %v237_v51 }
 0x31b   :  { %v246_v57 = vsel %vm243_vm10, %v245_v55, %v241_v54 }
 0x31c   :  { %v252_v60 = vmul.f32 %v250_v59, %v246_v57 }
 0x361   :  { %v255_v56 = vpop.permute.xlu2 %254 }
 0x362   :  { %v257_v58 = vmul.f32 %v255_v56, %v246_v57 }
 0x364   :  { %259 = vrot.lane.b32.xlu2 %v257_v58, %s1028_s20 }
 0x3be   :  { %v260_v61 = vpop.permute.xlu2 %259 }
 0x3bf   :  { %v262_v62 = vadd.f32 %v260_v61, %v252_v60  ;;  %v72_v60 = vld [vmem:[%s1275_s0 + $0x8] sm:$0x3]  ;;  %v73_v61 = vld [vmem:[%s1275_s0 + $0xa] sm:$0x3] }
 0x3c0   :  { %97 = vst [vmem:[#allocation1 + $0x20] ss:$4 sm:$0xff] %v72_v60 }
 0x3c1   :  { %924 = vtanh.f32 %v262_v62  ;;  %v320_v25 = vrot.slane %v262_v62, 6  ;;  %v74_v62 = vld [vmem:[%s1275_s0 + $0xc] sm:$0x3]  ;;  %99 = vst [vmem:[#allocation1 + $0x21] ss:$4 sm:$0xff] %v73_v61 }
 0x3c2   :  { %101 = vst [vmem:[#allocation1 + $0x22] ss:$4 sm:$0xff] %v74_v62 }
 0x3c7   :  { %v925_v63 = vpop.eup %924 }
 0x3c8   :  { %265 = vrot.lane.b32.xlu0 %v925_v63, %s1028_s20  ;;  %v75_v63 = vld [vmem:[%s1275_s0 + $0xe] sm:$0x3] }
 0x3c9   :  { %103 = vst [vmem:[#allocation1 + $0x23] ss:$4 sm:$0xff] %v75_v63 }
 0x43a   :  { %v266_v0 = vpop.permute.xlu0 %265 }
 0x43b   :  { %v268_v1 = vmul.f32 %v266_v0, %v246_v57  ;;  %v105_v0 = vld.sshfl [vmem:[#allocation1 + $0x20] sm:$0xff pattern:$0x73625140] }
 0x43c   :  { %875 = vmatmul.msk.f32.gmra.mxu0 %vm106_vm1, %v105_v0 }
 0x43d   :  { %v270_v2 = vrot.slane %v268_v1, 2 }
 0x43f   :  { %271 = vrot.lane.b32.xlu1 %v270_v2, %s1029_s4 }
 0x4b1   :  { %v272_v3 = vpop.permute.xlu1 %271 }
 0x4b2   :  { %879 = vmatmul.msk.f32.vlgmr.msra.gmra.mxu3 %vm138_vm6, %v272_v3 }
 0x4b9   :  { %v135_v2 = vpop.f32.mrf.mxu0 }
 0x4ba   :  { %v1187_v3 = vadd.f32 %v1144_v12, %v135_v2 }
 0x535   :  { %v292_v4 = vpop.f32.mrf.mxu3 }
 0x536   :  { %v296_v5 = vrot.slane %v292_v4, 4 }
 0x538   :  { %v298_v6 = vadd.f32 %v296_v5, %v1147_v15 }
 0x53a   :  { %926 = vtanh.f32 %v298_v6  ;;  %v880_v8 = vmul.f32 -1.442695, %v298_v6 }
 0x53c   :  { %928 = vpow2.f32 %v880_v8 }
 0x540   :  { %v927_v7 = vpop.eup %926 }
 0x541   :  { %324 = vrot.lane.b32.xlu2 %v927_v7, %s1028_s20 }
 0x542   :  { %v929_v9 = vpop.eup %928 }
 0x543   :  { %v302_v10 = vadd.f32 1.0, %v929_v9 }
 0x545   :  { %930 = vrcp.f32 %v302_v10  ;;  %v314_v18 = vand.u32 2147483648, %v302_v10  ;;  %vm308_vm12 = vweird.f32 %v302_v10  ;;  %v312_v19 = vand.u32 2147483647, %v302_v10 }
 0x547   :  { %v315_v21 = vor.u32 1.1754944e-38, %v314_v18  ;;  %vm313_vm14 = vcmp.eq.f32.partialorder %v312_v19, 8.507059e+37 }
 0x54b   :  { %v931_v11 = vpop.eup %930 }
 0x54c   :  { %v304_v13 = vmul.f32 %v931_v11, %v302_v10  ;;  %vm309_vm11 = vweird.f32 %v931_v11 }
 0x54d   :  { %vm310_vm13 = vmor %vm308_vm12, %vm309_vm11 }
 0x54e   :  { %v305_v14 = vsub.f32 1.0, %v304_v13 }
 0x550   :  { %v306_v16 = vmul.f32 %v931_v11, %v305_v14 }
 0x552   :  { %v307_v17 = vadd.f32 %v931_v11, %v306_v16 }
 0x554   :  { %v311_v20 = vsel %vm310_vm13, %v931_v11, %v307_v17 }
 0x555   :  { %v316_v23 = vsel %vm313_vm14, %v315_v21, %v311_v20 }
 0x556   :  { %v322_v26 = vmul.f32 %v320_v25, %v316_v23 }
 0x59b   :  { %v325_v22 = vpop.permute.xlu2 %324 }
 0x59c   :  { %v327_v24 = vmul.f32 %v325_v22, %v316_v23 }
 0x59e   :  { %329 = vrot.lane.b32.xlu0 %v327_v24, %s1028_s20 }
 0x610   :  { %v330_v27 = vpop.permute.xlu0 %329 }
 0x611   :  { %v332_v28 = vadd.f32 %v330_v27, %v322_v26 }
 0x613   :  { %932 = vtanh.f32 %v332_v28  ;;  %v390_v52 = vrot.slane %v332_v28, 6 }
 0x619   :  { %v933_v29 = vpop.eup %932 }
 0x61a   :  { %335 = vrot.lane.b32.xlu1 %v933_v29, %s1028_s20 }
 0x68c   :  { %v336_v30 = vpop.permute.xlu1 %335 }
 0x68d   :  { %v338_v31 = vmul.f32 %v336_v30, %v316_v23 }
 0x68f   :  { %v340_v32 = vrot.slane %v338_v31, 4 }
 0x691   :  { %341 = vrot.lane.b32.xlu2 %v340_v32, %s1029_s4 }
 0x6eb   :  { %v342_v33 = vpop.permute.xlu2 %341 }
 0x6ec   :  { %881 = vmatmul.msk.f32.vlgmr.msrb.gmra.mxu1 %vm138_vm6, %v342_v33 }
 0x769   :  { %v362_v34 = vpop.f32.mrf.mxu1 }
 0x76a   :  { %v366_v35 = vrot.slane %v362_v34, 2 }
 0x76c   :  { %v368_v36 = vadd.f32 %v366_v35, %v1147_v15 }
 0x76e   :  { %934 = vtanh.f32 %v368_v36  ;;  %v882_v38 = vmul.f32 -1.442695, %v368_v36 }
 0x770   :  { %936 = vpow2.f32 %v882_v38 }
 0x774   :  { %v935_v37 = vpop.eup %934 }
 0x775   :  { %394 = vrot.lane.b32.xlu0 %v935_v37, %s1028_s20 }
 0x776   :  { %v937_v39 = vpop.eup %936 }
 0x777   :  { %v372_v40 = vadd.f32 1.0, %v937_v39 }
 0x779   :  { %938 = vrcp.f32 %v372_v40  ;;  %v384_v46 = vand.u32 2147483648, %v372_v40  ;;  %vm378_vm0 = vweird.f32 %v372_v40  ;;  %v382_v47 = vand.u32 2147483647, %v372_v40 }
 0x77b   :  { %v385_v48 = vor.u32 1.1754944e-38, %v384_v46  ;;  %vm383_vm3 = vcmp.eq.f32.partialorder %v382_v47, 8.507059e+37 }
 0x77f   :  { %v939_v41 = vpop.eup %938 }
 0x780   :  { %v374_v42 = vmul.f32 %v939_v41, %v372_v40  ;;  %vm379_vm15 = vweird.f32 %v939_v41 }
 0x781   :  { %vm380_vm2 = vmor %vm378_vm0, %vm379_vm15  ;;  %vm695_vm0 = vcmask 1045504  }
 0x782   :  { %v375_v43 = vsub.f32 1.0, %v374_v42 }
 0x784   :  { %v376_v44 = vmul.f32 %v939_v41, %v375_v43 }
 0x786   :  { %v377_v45 = vadd.f32 %v939_v41, %v376_v44 }
 0x788   :  { %v381_v15 = vsel %vm380_vm2, %v939_v41, %v377_v45  ;;  %vm691_vm2 = vcmask 48128  }
 0x789   :  { %v386_v50 = vsel %vm383_vm3, %v385_v48, %v381_v15 }
 0x78a   :  { %v392_v53 = vmul.f32 %v390_v52, %v386_v50 }
 0x7e7   :  { %v395_v49 = vpop.permute.xlu0 %394 }
 0x7e8   :  { %v397_v51 = vmul.f32 %v395_v49, %v386_v50 }
 0x7ea   :  { %399 = vrot.lane.b32.xlu1 %v397_v51, %s1028_s20 }
 0x85c   :  { %v400_v54 = vpop.permute.xlu1 %399 }
 0x85d   :  { %v402_v55 = vadd.f32 %v400_v54, %v392_v53 }
 0x85f   :  { %940 = vtanh.f32 %v402_v55  ;;  %v457_v23 = vrot.slane %v402_v55, 6 }
 0x865   :  { %v941_v56 = vpop.eup %940 }
 0x866   :  { %405 = vrot.lane.b32.xlu2 %v941_v56, %s1028_s20 }
 0x8c0   :  { %v406_v57 = vpop.permute.xlu2 %405 }
 0x8c1   :  { %v408_v58 = vmul.f32 %v406_v57, %v386_v50 }
 0x8c3   :  { %v410_v59 = vrot.slane %v408_v58, 6 }
 0x8c5   :  { %411 = vrot.lane.b32.xlu0 %v410_v59, %s1029_s4 }
 0x937   :  { %v412_v1 = vpop.permute.xlu0 %411 }
 0x938   :  { %883 = vmatmul.msk.f32.vlgmr.msrb.gmra.mxu2 %vm138_vm6, %v412_v1 }
 0x9bb   :  { %v432_v4 = vpop.f32.mrf.mxu2 }
 0x9bc   :  { %v435_v5 = vadd.f32 %v432_v4, %v1187_v3 }
 0x9be   :  { %942 = vtanh.f32 %v435_v5  ;;  %v884_v7 = vmul.f32 -1.442695, %v435_v5 }
 0x9c0   :  { %944 = vpow2.f32 %v884_v7 }
 0x9c4   :  { %v943_v6 = vpop.eup %942 }
 0x9c5   :  { %461 = vrot.lane.b32.xlu1 %v943_v6, %s1028_s20 }
 0x9c6   :  { %v945_v8 = vpop.eup %944 }
 0x9c7   :  { %v439_v9 = vadd.f32 1.0, %v945_v8 }
 0x9c9   :  { %946 = vrcp.f32 %v439_v9  ;;  %v451_v12 = vand.u32 2147483648, %v439_v9  ;;  %vm445_vm4 = vweird.f32 %v439_v9  ;;  %v449_v17 = vand.u32 2147483647, %v439_v9 }
 0x9cb   :  { %v452_v19 = vor.u32 1.1754944e-38, %v451_v12  ;;  %vm450_vm7 = vcmp.eq.f32.partialorder %v449_v17, 8.507059e+37 }
 0x9cf   :  { %v947_v10 = vpop.eup %946 }
 0x9d0   :  { %v441_v11 = vmul.f32 %v947_v10, %v439_v9  ;;  %vm446_vm1 = vweird.f32 %v947_v10 }
 0x9d1   :  { %vm447_vm5 = vmor %vm445_vm4, %vm446_vm1 }
 0x9d2   :  { %v442_v13 = vsub.f32 1.0, %v441_v11 }
 0x9d4   :  { %v443_v14 = vmul.f32 %v947_v10, %v442_v13 }
 0x9d6   :  { %v444_v16 = vadd.f32 %v947_v10, %v443_v14 }
 0x9d8   :  { %v448_v18 = vsel %vm447_vm5, %v947_v10, %v444_v16 }
 0x9d9   :  { %v453_v21 = vsel %vm450_vm7, %v452_v19, %v448_v18  ;;  %vm732_vm7 = vcmask 523264  }
 0x9da   :  { %v459_v24 = vmul.f32 %v457_v23, %v453_v21 }
 0xa37   :  { %v462_v20 = vpop.permute.xlu1 %461 }
 0xa38   :  { %v464_v22 = vmul.f32 %v462_v20, %v453_v21 }
 0xa3a   :  { %466 = vrot.lane.b32.xlu2 %v464_v22, %s1028_s20 }
 0xa94   :  { %v467_v25 = vpop.permute.xlu2 %466 }
 0xa95   :  { %v469_v26 = vadd.f32 %v467_v25, %v459_v24 }
 0xa97   :  { %948 = vtanh.f32 %v469_v26  ;;  %v526_v49 = vrot.slane %v469_v26, 6 }
 0xa9d   :  { %v949_v27 = vpop.eup %948 }
 0xa9e   :  { %472 = vrot.lane.b32.xlu0 %v949_v27, %s1028_s20 }
 0xb10   :  { %v473_v28 = vpop.permute.xlu0 %472 }
 0xb11   :  { %v475_v29 = vmul.f32 %v473_v28, %v453_v21 }
 0xb13   :  { %477 = vrot.lane.b32.xlu1 %v475_v29, %s1029_s4 }
 0xb85   :  { %v478_v30 = vpop.permute.xlu1 %477 }
 0xb86   :  { %885 = vmatmul.msk.f32.vlgmr.msrb.gmra.mxu3 %vm138_vm6, %v478_v30 }
 0xc09   :  { %v498_v31 = vpop.f32.mrf.mxu3 }
 0xc0a   :  { %v502_v32 = vrot.slane %v498_v31, 6  ;;  %v686_v31 = vld [vmem:[%s1280_s5] sm:$0x3f] }
 0xc0b   :  { %891 = vmatpush.msk.msra.mxu2 %vm695_vm0, %v686_v31 }
 0xc0c   :  { %v504_v33 = vadd.f32 %v502_v32, %v1187_v3  ;;  %v685_v32 = vld [vmem:[%s1276_s1] sm:$0x3] }
 0xc0d   :  { %892 = vmatmul.msk.f32.vlgmr.msra.gmra.mxu2 %vm691_vm2, %v685_v32 }
 0xc0e   :  { %950 = vtanh.f32 %v504_v33  ;;  %v886_v35 = vmul.f32 -1.442695, %v504_v33 }
 0xc10   :  { %952 = vpow2.f32 %v886_v35 }
 0xc14   :  { %v951_v34 = vpop.eup %950 }
 0xc15   :  { %530 = vrot.lane.b32.xlu2 %v951_v34, %s1028_s20 }
 0xc16   :  { %v953_v36 = vpop.eup %952 }
 0xc17   :  { %v508_v37 = vadd.f32 1.0, %v953_v36 }
 0xc19   :  { %954 = vrcp.f32 %v508_v37  ;;  %v520_v43 = vand.u32 2147483648, %v508_v37  ;;  %vm514_vm9 = vweird.f32 %v508_v37  ;;  %v518_v44 = vand.u32 2147483647, %v508_v37 }
 0xc1b   :  { %v521_v46 = vor.u32 1.1754944e-38, %v520_v43  ;;  %vm519_vm11 = vcmp.eq.f32.partialorder %v518_v44, 8.507059e+37  ;;  %v727_v44 = vld [vmem:[%s1282_s7 + $0x38] sm:$0xff] }
 0xc1c   :  { %744 = vmatpush.msra.mxu3 %v727_v44 }
 0xc1f   :  { %v955_v38 = vpop.eup %954 }
 0xc20   :  { %v510_v39 = vmul.f32 %v955_v38, %v508_v37  ;;  %vm515_vm8 = vweird.f32 %v955_v38 }
 0xc21   :  { %vm516_vm10 = vmor %vm514_vm9, %vm515_vm8  ;;  %vm763_vm8 = vcmask 130048   ;;  %vm854_vm9 = vcmask 8192  }
 0xc22   :  { %v511_v40 = vsub.f32 1.0, %v510_v39 }
 0xc24   :  { %v512_v41 = vmul.f32 %v955_v38, %v511_v40 }
 0xc26   :  { %v513_v42 = vadd.f32 %v955_v38, %v512_v41 }
 0xc28   :  { %v517_v45 = vsel %vm516_vm10, %v955_v38, %v513_v42 }
 0xc29   :  { %v522_v15 = vsel %vm519_vm11, %v521_v46, %v517_v45  ;;  %v726_v45 = vld [vmem:[%s1282_s7 + $0x30] sm:$0xff]  ;;  %v725_v46 = vld [vmem:[%s1282_s7 + $0x28] sm:$0xff] }
 0xc2a   :  { %v528_v50 = vmul.f32 %v526_v49, %v522_v15  ;;  %745 = vmatpush.msra.mxu3 %v726_v45  ;;  %v721_v49 = vld [vmem:[%s1282_s7 + $0x8] sm:$0xff] }
 0xc2c   :  { %746 = vmatpush.msra.mxu3 %v725_v46 }
 0xc6f   :  { %v531_v47 = vpop.permute.xlu2 %530 }
 0xc70   :  { %v533_v48 = vmul.f32 %v531_v47, %v522_v15  ;;  %v724_v47 = vld [vmem:[%s1282_s7 + $0x20] sm:$0xff] }
 0xc71   :  { %747 = vmatpush.msra.mxu3 %v724_v47 }
 0xc72   :  { %535 = vrot.lane.b32.xlu0 %v533_v48, %s1028_s20  ;;  %v722_v48 = vld [vmem:[%s1282_s7 + $0x10] sm:$0xff] }
 0xce4   :  { %v536_v51 = vpop.permute.xlu0 %535 }
 0xce5   :  { %v538_v52 = vadd.f32 %v536_v51, %v528_v50  ;;  %v720_v50 = vld [vmem:[%s1282_s7] sm:$0xff] }
 0xce7   :  { %956 = vtanh.f32 %v538_v52  ;;  %v596_v16 = vrot.slane %v538_v52, 6 }
 0xced   :  { %v957_v53 = vpop.eup %956 }
 0xcee   :  { %541 = vrot.lane.b32.xlu1 %v957_v53, %s1028_s20 }
 0xd60   :  { %v542_v54 = vpop.permute.xlu1 %541 }
 0xd61   :  { %v544_v55 = vmul.f32 %v542_v54, %v522_v15  ;;  %v723_v15 = vld [vmem:[%s1282_s7 + $0x18] sm:$0xff] }
 0xd62   :  { %748 = vmatpush.msra.mxu3 %v723_v15 }
 0xd63   :  { %v546_v56 = vrot.slane %v544_v55, 2  ;;  %v907_v55 = vld [vmem:[#allocation3] ss:$0 sm:$0xff] }
 0xd64   :  { %749 = vmatpush.msra.mxu3 %v722_v48 }
 0xd65   :  { %547 = vrot.lane.b32.xlu2 %v546_v56, %s1029_s4 }
 0xd66   :  { %750 = vmatpush.msra.mxu3 %v721_v49 }
 0xd68   :  { %751 = vmatpush.msra.mxu3 %v720_v50 }
 0xdbf   :  { %v548_v57 = vpop.permute.xlu2 %547 }
 0xdc0   :  { %887 = vmatmul.msk.f32.vlgmr.msrb.gmra.mxu0 %vm138_vm6, %v548_v57  ;;  %v716_v57 = vpop.f32.mrf.mxu2 }
 0xe3d   :  { %v568_v58 = vpop.f32.mrf.mxu0 }
 0xe3e   :  { %v572_v59 = vrot.slane %v568_v58, 4  ;;  %v717_v58 = vadd.f32 %v907_v55, %v716_v57 }
 0xe40   :  { %v574_v60 = vadd.f32 %v572_v59, %v1187_v3  ;;  %v719_v59 = vmax.f32 %v717_v58, 0.0 }
 0xe42   :  { %958 = vtanh.f32 %v574_v60  ;;  %v888_v62 = vmul.f32 -1.442695, %v574_v60  ;;  %893 = vmatmul.msk.f32.vlgmr.msra.gmra.mxu3 %vm732_vm7, %v719_v59  ;;  %v760_v60 = vld [vmem:[%s1284_s9 + $0x18] sm:$0xff] }
 0xe43   :  { %805 = vmatpush.msrb.mxu1 %v760_v60 }
 0xe44   :  { %960 = vpow2.f32 %v888_v62  ;;  %v762_v62 = vld [vmem:[%s1285_s10 + $0x8] sm:$0xff] }
 0xe45   :  { %781 = vmatpush.msra.mxu0 %v762_v62 }
 0xe48   :  { %v959_v61 = vpop.eup %958 }
 0xe49   :  { %600 = vrot.lane.b32.xlu0 %v959_v61, %s1028_s20  ;;  %v759_v61 = vld [vmem:[%s1284_s9 + $0x10] sm:$0xff] }
 0xe4a   :  { %v961_v63 = vpop.eup %960  ;;  %806 = vmatpush.msrb.mxu1 %v759_v61 }
 0xe4b   :  { %v578_v0 = vadd.f32 1.0, %v961_v63  ;;  %v758_v63 = vld [vmem:[%s1284_s9 + $0x8] sm:$0xff] }
 0xe4c   :  { %807 = vmatpush.msrb.mxu1 %v758_v63 }
 0xe4d   :  { %962 = vrcp.f32 %v578_v0  ;;  %v590_v7 = vand.u32 2147483648, %v578_v0  ;;  %vm584_vm13 = vweird.f32 %v578_v0  ;;  %v588_v8 = vand.u32 2147483647, %v578_v0 }
 0xe4f   :  { %v591_v10 = vor.u32 1.1754944e-38, %v590_v7  ;;  %vm589_vm15 = vcmp.eq.f32.partialorder %v588_v8, 8.507059e+37 }
 0xe53   :  { %v963_v1 = vpop.eup %962 }
 0xe54   :  { %v580_v2 = vmul.f32 %v963_v1, %v578_v0  ;;  %vm585_vm12 = vweird.f32 %v963_v1  ;;  %v761_v0 = vld [vmem:[%s1285_s10] sm:$0xff] }
 0xe55   :  { %vm586_vm14 = vmor %vm584_vm13, %vm585_vm12  ;;  %782 = vmatpush.msra.mxu0 %v761_v0 }
 0xe56   :  { %v581_v4 = vsub.f32 1.0, %v580_v2 }
 0xe58   :  { %v582_v5 = vmul.f32 %v963_v1, %v581_v4 }
 0xe5a   :  { %v583_v6 = vadd.f32 %v963_v1, %v582_v5 }
 0xe5c   :  { %v587_v9 = vsel %vm586_vm14, %v963_v1, %v583_v6  ;;  %v757_v1 = vld [vmem:[%s1284_s9] sm:$0xff] }
 0xe5d   :  { %v592_v13 = vsel %vm589_vm15, %v591_v10, %v587_v9  ;;  %808 = vmatpush.msrb.mxu1 %v757_v1  ;;  %v908_v6 = vld [vmem:[%s1283_s8] ss:$0 sm:$0xff] }
 0xe5e   :  { %v598_v12 = vmul.f32 %v596_v16, %v592_v13  ;;  %v909_v16 = vld [vmem:[%s1286_s11] ss:$0 sm:$0xff]  ;;  %s863_s11 = sshll.u32 %s1289_s14, 4  ;;  %s864_s11 = int_to_ptr.hbm [resolvable:$true] %s863_s11 }
 0xebb   :  { %v601_v11 = vpop.permute.xlu0 %600 }
 0xebc   :  { %v603_v14 = vmul.f32 %v601_v11, %v592_v13  ;;  %v820_v11 = vld [vmem:[#allocation2] sm:$0x1] }
 0xebe   :  { %605 = vrot.lane.b32.xlu1 %v603_v14, %s1028_s20 }
 0xec5   :  { %v753_v7 = vpop.f32.mrf.mxu3 }
 0xec6   :  { %v754_v8 = vadd.f32 %v908_v6, %v753_v7 }
 0xec8   :  { %v756_v9 = vmax.f32 %v754_v8, 0.0 }
 0xeca   :  { %894 = vmatmul.msk.f32.vlgmr.msra.gmra.mxu0 %vm763_vm8, %v756_v9 }
 0xf30   :  { %v606_v17 = vpop.permute.xlu1 %605 }
 0xf31   :  { %v608_v18 = vadd.f32 %v606_v17, %v598_v12 }
 0xf33   :  { %964 = vtanh.f32 %v608_v18  ;;  %v666_v51 = vrot.slane %v608_v18, 6 }
 0xf39   :  { %v965_v19 = vpop.eup %964 }
 0xf3a   :  { %611 = vrot.lane.b32.xlu2 %v965_v19, %s1028_s20 }
 0xf47   :  { %v784_v14 = vpop.f32.mrf.mxu0 }
 0xf94   :  { %v612_v20 = vpop.permute.xlu2 %611 }
 0xf95   :  { %v614_v21 = vmul.f32 %v612_v20, %v592_v13  ;;  %v1030_v13 = vmov 0   ;;  %v819_v20 = vld [vmem:[%s1287_s12] sm:$0x1] }
 0xf96   :  { %904 = vset.pattern.permute.xlu2 %v1030_v13  ;;  %905 = vset.pattern.permute.xlu0 %v1030_v13 }
 0xf97   :  { %v616_v22 = vrot.slane %v614_v21, 4 }
 0xf99   :  { %617 = vrot.lane.b32.xlu0 %v616_v22, %s1029_s4 }
0x100b   :  { %v618_v23 = vpop.permute.xlu0 %617 }
0x100c   :  { %889 = vmatmul.msk.f32.vlgmr.msra.gmra.mxu1 %vm138_vm6, %v618_v23 }
0x1089   :  { %v638_v24 = vpop.f32.mrf.mxu1 }
0x108a   :  { %v642_v25 = vrot.slane %v638_v24, 2 }
0x108c   :  { %v644_v26 = vadd.f32 %v642_v25, %v1187_v3 }
0x108e   :  { %966 = vtanh.f32 %v644_v26  ;;  %v890_v28 = vmul.f32 -1.442695, %v644_v26 }
0x1090   :  { %968 = vpow2.f32 %v890_v28 }
0x1094   :  { %v967_v27 = vpop.eup %966 }
0x1095   :  { %670 = vrot.lane.b32.xlu1 %v967_v27, %s1028_s20 }
0x1096   :  { %v969_v29 = vpop.eup %968 }
0x1097   :  { %v648_v30 = vadd.f32 1.0, %v969_v29 }
0x1099   :  { %970 = vrcp.f32 %v648_v30  ;;  %v660_v37 = vand.u32 2147483648, %v648_v30  ;;  %vm654_vm1 = vweird.f32 %v648_v30  ;;  %v658_v38 = vand.u32 2147483647, %v648_v30 }
0x109b   :  { %v661_v40 = vor.u32 1.1754944e-38, %v660_v37  ;;  %vm659_vm5 = vcmp.eq.f32.partialorder %v658_v38, 8.507059e+37 }
0x109f   :  { %v971_v3 = vpop.eup %970 }
0x10a0   :  { %v650_v33 = vmul.f32 %v971_v3, %v648_v30  ;;  %vm655_vm3 = vweird.f32 %v971_v3 }
0x10a1   :  { %vm656_vm4 = vmor %vm654_vm1, %vm655_vm3 }
0x10a2   :  { %v651_v34 = vsub.f32 1.0, %v650_v33 }
0x10a4   :  { %v652_v35 = vmul.f32 %v971_v3, %v651_v34 }
0x10a6   :  { %v653_v36 = vadd.f32 %v971_v3, %v652_v35 }
0x10a8   :  { %v657_v39 = vsel %vm656_vm4, %v971_v3, %v653_v36 }
0x10a9   :  { %v662_v42 = vsel %vm659_vm5, %v661_v40, %v657_v39 }
0x10aa   :  { %v668_v52 = vmul.f32 %v666_v51, %v662_v42 }
0x1107   :  { %v671_v41 = vpop.permute.xlu1 %670 }
0x1108   :  { %v673_v43 = vmul.f32 %v671_v41, %v662_v42 }
0x110a   :  { %675 = vrot.lane.b32.xlu2 %v673_v43, %s1028_s20 }
0x1112   :  { %823 = vperm.xlu2 %904, %v820_v11  }
0x1164   :  { %v676_v53 = vpop.permute.xlu2 %675 }
0x1165   :  { %v678_v54 = vadd.f32 %v676_v53, %v668_v52 }
0x1167   :  { %972 = vtanh.f32 %v678_v54 }
0x116c   :  { %v824_v21 = vpop.permute.xlu2 %823 }
0x116d   :  { %v973_v56 = vpop.eup %972  ;;  %v826_v22 = vperm.slane %v824_v21, 0 }
0x116e   :  { %681 = vrot.lane.b32.xlu0 %v973_v56, %s1028_s20 }
0x11e0   :  { %v682_v2 = vpop.permute.xlu0 %681 }
0x11e1   :  { %v684_v4 = vmul.f32 %v682_v2, %v662_v42 }
0x11e3   :  { %v788_v5 = vrot.slane %v684_v4, 6 }
0x11e5   :  { %789 = vrot.lane.b32.xlu1 %v788_v5, %s1029_s4 }
0x1257   :  { %v790_v10 = vpop.permute.xlu1 %789 }
0x1258   :  { %895 = vmatmul.msk.f32.vlgmr.msrb.gmra.mxu1 %vm138_vm6, %v790_v10 }
0x12d5   :  { %v810_v12 = vpop.f32.mrf.mxu1 }
0x12d6   :  { %v811_v17 = vadd.f32 %v810_v12, %v784_v14 }
0x12d8   :  { %v817_v18 = vadd.f32 %v909_v16, %v811_v17 }
0x12da   :  { %v818_v19 = vmax.f32 %v817_v18, 0.0 }
0x12dc   :  { %896 = vmatpush.xpose.msk.msrb.mxu2 %vm138_vm6, %v818_v19 }
0x12df   :  { %897 = vmatmul.msk.f32.vlgmr.msrb.gmra.mxu2 %vm138_vm6, %v819_v20 }
0x1362   :  { %v850_v23 = vpop.f32.mrf.mxu2 }
0x1363   :  { %v851_v24 = vadd.f32 %v850_v23, %v826_v22 }
0x1365   :  { %v853_v25 = vmax.f32 %v851_v24, 0.0 }
0x1367   :  { %855 = vst.msk [vmem:[#allocation6] sm:$0x1] %vm854_vm9, %v853_v25 }
0x1368   :  { %866 = dma.vmem_to_hbm [thread:$0]  %s862_s18, 16, %s864_s11, [#allocation5]  }
0x1369   :  { %1024 = dma.done.wait [#allocation5], 16  }
0x136a   :  { %1025 = vsyncadd [#allocation5], 4294967280 }
0x136b   :  { %871 = vsyncpa [#allocation4], 1 }
0x136c   :  { %872 = vsyncpa [#allocation5], 1 }

</bundles_post_ra>
